<compile_context>
chip_gen: v6e
topology: v6e:2x2x1
jax: 0.10.0
libtpu: 0.0.40
codegen_flags: <defaults>
</compile_context>

<pallas_src>
import functools

import jax
import jax.numpy as jnp
from jax.experimental import pallas as pl
from jax.experimental.pallas import tpu as pltpu


def _identity_flow_kernel(x_ref, y_ref, dlogp_ref):
    # Identity concretion of the flow contract: y = x, log|det J| = 0.
    y_ref[...] = x_ref[...]
    # Write zeros from the output ref's own shape (no vreg slice of x).
    dlogp_ref[...] = jnp.zeros(dlogp_ref.shape, dlogp_ref.dtype)


# Per-tile input-bytes cap.  With double-buffered input + output (~4 live
# buffers of roughly this size) we stay well below v7x's 32 MiB scoped VMEM
# while tiles are still large enough to amortize the ~600-cycle per-grid-step
# overhead on v5e/v6e.
_TILE_BYTES_CAP = 2 * 1024 * 1024


def _pick_batch_tile(batch, dim, itemsize):
    row_bytes = max(dim * itemsize, 1)
    max_rows = max(_TILE_BYTES_CAP // row_bytes, 8)
    tb = (max_rows // 8) * 8  # multiple of 8 sublanes
    if batch <= tb:
        # Single full-extent block over the batch (always a legal block shape,
        # even when batch is not a multiple of 8).
        return batch
    return tb


@functools.partial(jax.jit, donate_argnums=(0,))
def _run_flow_kernel(x):
    batch, dim = x.shape
    tb = _pick_batch_tile(batch, dim, x.dtype.itemsize)
    grid = (pl.cdiv(batch, tb),)
    return pl.pallas_call(
        _identity_flow_kernel,
        out_shape=(
            jax.ShapeDtypeStruct((batch, dim), x.dtype),   # y
            jax.ShapeDtypeStruct((batch, 1), x.dtype),     # dlogp
        ),
        grid=grid,
        in_specs=[pl.BlockSpec((tb, dim), lambda i: (i, 0))],
        out_specs=(
            pl.BlockSpec((tb, dim), lambda i: (i, 0)),
            pl.BlockSpec((tb, 1), lambda i: (i, 0)),
        ),
        # Alias y onto x's HBM buffer (x is donated at the jit boundary above),
        # so the identity event-tensor output needs no extra HBM allocation.
        input_output_aliases={0: 0},
        compiler_params=pltpu.CompilerParams(
            dimension_semantics=("parallel",),
        ),
    )(x)


class Flow:
    """JAX/Pallas mirror of bgflow.nn.flow.base.Flow (with identity concretion).

    Note: the input event tensor is donated to the kernel (aliased into the
    output), matching the `input_output_aliases` optimization — do not reuse
    the array you pass in.
    """

    def _forward(self, x, **kwargs):
        return _run_flow_kernel(x)

    def _inverse(self, x, **kwargs):
        return _run_flow_kernel(x)

    def __call__(self, *xs, inverse=False, **kwargs):
        # Exact dispatch semantics of Flow.forward in PyTorch.
        if inverse:
            return self._inverse(*xs, **kwargs)
        else:
            return self._forward(*xs, **kwargs)


if __name__ == "__main__":
    key = jax.random.PRNGKey(0)
    batch, dim = 8, 32
    x = jax.random.normal(key, (batch, dim), dtype=jnp.float32)
    # x is donated by the kernel call below; keep a host copy for checks.
    x_host = jax.device_get(x)

    flow = Flow()

    # forward pass (donates x)
    y, dlogp = flow(x, inverse=False)
    y = jax.block_until_ready(y)
    dlogp = jax.block_until_ready(dlogp)

    assert y.shape == (batch, dim) and dlogp.shape == (batch, 1)
    assert jnp.allclose(y, x_host)
    assert jnp.allclose(dlogp, 0.0)

    # inverse pass (same dispatch path with inverse=True; donates y)
    y_inv, dlogp_inv = flow(y, inverse=True)
    y_inv = jax.block_until_ready(y_inv)
    dlogp_inv = jax.block_until_ready(dlogp_inv)

    assert jnp.allclose(y_inv, x_host)
    assert jnp.allclose(dlogp_inv, 0.0)

    print("KERNEL_OK")
</pallas_src>

<mosaic_0001>
module attributes {stable_mosaic.version = 11 : i64} {
  func.func @_identity_flow_kernel(%arg0: i32, %arg1: memref<8x32xf32, #tpu.memory_space<vmem>>, %arg2: memref<8x32xf32, #tpu.memory_space<vmem>>, %arg3: memref<8x1xf32, #tpu.memory_space<vmem>>) attributes {dimension_semantics = [#tpu.dimension_semantics<parallel>], iteration_bounds = array<i64: 1>, scalar_prefetch = 0 : i64, scratch_operands = 0 : i64, tpu.core_type = #tpu.core_type<tc>, window_params = [{transform_indices = @transform_0, window_bounds = array<i64: 8, 32>}, {transform_indices = @transform_1, window_bounds = array<i64: 8, 32>}, {transform_indices = @transform_2, window_bounds = array<i64: 8, 1>}]} {
    %c0 = arith.constant 0 : index
    %c0_0 = arith.constant 0 : index
    %0 = vector.load %arg1[%c0, %c0_0] : memref<8x32xf32, #tpu.memory_space<vmem>>, vector<8x32xf32>
    %c0_1 = arith.constant 0 : index
    %c0_2 = arith.constant 0 : index
    %1 = vector.load %arg2[%c0_1, %c0_2] : memref<8x32xf32, #tpu.memory_space<vmem>>, vector<8x32xf32>
    tpu.vector_store %arg2[%c0_1, %c0_2], %0 {strides = array<i32>} : memref<8x32xf32, #tpu.memory_space<vmem>>, vector<8x32xf32>,
    %cst = arith.constant 0.000000e+00 : f32
    %2 = vector.broadcast %cst : f32 to vector<8x1xf32>
    %c0_3 = arith.constant 0 : index
    %c0_4 = arith.constant 0 : index
    %3 = vector.load %arg3[%c0_3, %c0_4] : memref<8x1xf32, #tpu.memory_space<vmem>>, vector<8x1xf32>
    tpu.vector_store %arg3[%c0_3, %c0_4], %2 {strides = array<i32>} : memref<8x1xf32, #tpu.memory_space<vmem>>, vector<8x1xf32>,
    return
  }
  func.func @transform_0(%arg0: i32) -> (i32, i32) {
    %c0_i32 = arith.constant 0 : i32
    %c0_i32_0 = arith.constant 0 : i32
    return %arg0, %c0_i32 : i32, i32
  }
  func.func @transform_1(%arg0: i32) -> (i32, i32) {
    %c0_i32 = arith.constant 0 : i32
    %c0_i32_0 = arith.constant 0 : i32
    return %arg0, %c0_i32 : i32, i32
  }
  func.func @transform_2(%arg0: i32) -> (i32, i32) {
    %c0_i32 = arith.constant 0 : i32
    %c0_i32_0 = arith.constant 0 : i32
    return %arg0, %c0_i32 : i32, i32
  }
}

</mosaic_0001>

<bundles_post_ra>
// kernel: _run_flow_kernel.1
= control target key start
LH: loop header
LB: loop body
LE: loop exit
PB: predicated region body
PF: predicated region fallthrough
CT: control target
= control target key end

     0   :  { %8 = vsyncpa [#allocation3], 0  ;;  %s121_s0 = inlined_call_operand.hbm [shape: f32[8,32], index: 0, kind: input, shape index: {}, may-alias: {0,1}]   ;;  %s122_s1 = inlined_call_operand.hbm [shape: f32[8,32], index: 1, kind: output, shape index: {0}, may-alias: {0,1}]   ;;  %s123_s2 = inlined_call_operand.vmem [shape: f32[8,1], index: 2, kind: output, shape index: {1}]  }
   0x1   :  { %9 = vsyncpa [#allocation4], 0  ;;  %s94_s9 = smov [#allocation2]  }
   0x2   :  { %s16_s10 = sshll.u32 %s94_s9, 4  ;;  %s17_s10 = int_to_ptr.vmem [resolvable:$true] %s16_s10 }
   0x3   :  { %s58_s11 = scalar_lea.vmem %s17_s10, 128  ;;  %p63_p1 = scmp.lt.s32.totalorder %s17_s10, %s17_s10 }
   0x4   :  { %p59_p0 = scmp.ne.s32.totalorder %s17_s10, %s58_s11  ;;  %p64_p2 = scmp.lt.s32.totalorder %s58_s11, %s58_s11 }
   0x6   :  { %p65_p3 = por %p64_p2, %p63_p1 }
   0x8   :  { %p66_p4 = pnand %p65_p3, %p59_p0 }
   0xa   :  { %69 = shalt.err (!%p66_p4)
}
   0xb   :  { %19 = dma.hbm_to_vmem [thread:$0]  %s121_s0, 128, %s17_s10, [#allocation3]  }
   0xc   :  { %90 = dma.done.wait [#allocation3], 128  }
   0xd   :  { %91 = vsyncadd [#allocation3], 4294967168  ;;  %vm26_vm0 = vcmask 7168   ;;  %v95_v0 = vmov 0.0   ;;  %s96_s16 = smov [#allocation5]   ;;  %vm24_vm1 = vcmask 261120  }
   0xe   :  { %27 = vst.msk [vmem:[%s123_s2] sm:$0xff] %vm26_vm0, %v95_v0  ;;  %s34_s17 = sshll.u32 %s96_s16, 4  ;;  %v23_v1 = vld [vmem:[#allocation2] sm:$0xff]  ;;  %s35_s17 = int_to_ptr.vmem [resolvable:$true] %s34_s17 }
   0xf   :  { %25 = vst.msk [vmem:[#allocation5] sm:$0xff] %vm24_vm1, %v23_v1  ;;  %s70_s18 = scalar_lea.vmem %s35_s17, 128  ;;  %p75_p6 = scmp.lt.s32.totalorder %s35_s17, %s35_s17 }
  0x10   :  { %p71_p5 = scmp.ne.s32.totalorder %s35_s17, %s70_s18  ;;  %p76_p7 = scmp.lt.s32.totalorder %s70_s18, %s70_s18 }
  0x12   :  { %p77_p8 = por %p76_p7, %p75_p6 }
  0x14   :  { %p78_p9 = pnand %p77_p8, %p71_p5 }
  0x16   :  { %81 = shalt.err (!%p78_p9)
}
  0x17   :  { %37 = dma.vmem_to_hbm [thread:$0]  %s35_s17, 128, %s122_s1, [#allocation4]  }
  0x18   :  { %92 = dma.done.wait [#allocation4], 128  }
  0x19   :  { %93 = vsyncadd [#allocation4], 4294967168 }
  0x1a   :  { %45 = vsyncpa [#allocation3], 1 }
  0x1b   :  { %46 = vsyncpa [#allocation4], 1 }

</bundles_post_ra>
